<compile_context>
chip_gen: v6e
topology: v6e:2x2x1
jax: 0.10.0
libtpu: 0.0.40
codegen_flags: <defaults>
</compile_context>

<pallas_src>
import functools

import jax
import jax.numpy as jnp
from jax import lax
from jax.experimental import pallas as pl
from jax.experimental.pallas import tpu as pltpu


def _make_fusion_kernel(mul):
    """Kernel over refs: xpacked_0..xpacked_{mul-1}, bd_weight, bias, out."""

    def kernel(*refs):
        x_refs = refs[:mul]          # each (tm_p, lane)   lane-dense packed features
        bd_ref = refs[mul]           # (mul*lane, lane)    stacked block-diag W^T (resident)
        b_ref = refs[mul + 1]        # (1, lane) float32   pre-tiled bias
        o_ref = refs[mul + 2]        # (tm_p, lane)        lane-dense packed output

        # Lane concat of the packed features -> (tm_p, mul*lane).  Pure layout
        # work (XLU slot is idle here); enables a single large-K MXU dot.
        if mul > 1:
            xcat = jnp.concatenate([r[...] for r in x_refs], axis=-1)
        else:
            xcat = x_refs[0][...]

        # One dot: (tm_p, mul*lane) @ (mul*lane, lane) accumulated in f32.
        acc = lax.dot_general(
            xcat, bd_ref[...],
            dimension_numbers=(((1,), (0,)), ((), ())),
            preferred_element_type=jnp.float32)

        o_ref[...] = (acc + b_ref[...]).astype(o_ref.dtype)

    return kernel


@functools.partial(jax.jit, static_argnames=("max_rows",))
def fusion_forward(features, weight, bias, *, max_rows=4096):
    """features: tuple of (B, L, dim) arrays; weight: (dim, dim*mul); bias: (dim,)."""
    mul = len(features)
    B, L, dim = features[0].shape
    N, K = weight.shape
    assert K == dim * mul and N == dim
    M = B * L

    # --- lane-densification factor: pack `pack` logical rows into one 128-lane row.
    pack = (128 // dim) if (dim < 128 and 128 % dim == 0) else 1
    lane = pack * dim
    M_pad = ((M + pack - 1) // pack) * pack
    Mp = M_pad // pack

    # Packed feature views: (M, dim) -> (Mp, lane).  Free contiguous reshapes
    # (padding only when M % pack != 0).
    xs = []
    for f in features:
        x = f.reshape(M, dim)
        if M_pad != M:
            x = jnp.pad(x, ((0, M_pad - M), (0, 0)))
        xs.append(x.reshape(Mp, lane))

    # Stacked block-diagonal weight, built once on host (~mul*lane*lane*4 bytes):
    #   bd[h*lane + j*dim + c, j*dim + n] = W[n, h*dim + c]
    eye = jnp.eye(pack, dtype=weight.dtype)
    bd = jnp.concatenate(
        [jnp.kron(eye, weight[:, h * dim:(h + 1) * dim].T) for h in range(mul)],
        axis=0)                                   # (mul*lane, lane)

    # Bias tiled across the packed lane groups, pre-cast to f32 once.
    b_packed = jnp.tile(bias.astype(jnp.float32), pack).reshape(1, lane)

    # Row tile (packed rows).  max_rows logical rows per step (~0.35 us/step
    # overhead amortized); keep a multiple of 8 sublanes unless it's the full
    # extent.  Non-dividing final block is handled by Pallas boundary padding
    # (padded rows are independent; OOB output writes are discarded).
    max_tm_p = max(8, (max_rows // pack) // 8 * 8)
    tm_p = Mp if Mp <= max_tm_p else max_tm_p
    grid = pl.cdiv(Mp, tm_p)

    itemsize = jnp.dtype(features[0].dtype).itemsize
    w_itemsize = jnp.dtype(weight.dtype).itemsize
    cost = pl.CostEstimate(
        flops=2 * Mp * (mul * lane) * lane,            # actual MXU flops (incl. zeros)
        transcendentals=0,
        bytes_accessed=M_pad * mul * dim * itemsize    # activations in
        + mul * lane * lane * w_itemsize               # resident weight
        + lane * 4                                     # bias
        + M_pad * dim * itemsize,                      # output
    )

    in_specs = (
        [pl.BlockSpec((tm_p, lane), lambda i: (i, 0)) for _ in range(mul)]   # feature tiles
        + [pl.BlockSpec((mul * lane, lane), lambda i: (0, 0))]               # resident weight
        + [pl.BlockSpec((1, lane), lambda i: (0, 0))]                        # bias
    )

    out = pl.pallas_call(
        _make_fusion_kernel(mul),
        out_shape=jax.ShapeDtypeStruct((Mp, lane), features[0].dtype),
        grid_spec=pltpu.PrefetchScalarGridSpec(
            num_scalar_prefetch=0,
            grid=(grid,),
            in_specs=in_specs,
            out_specs=pl.BlockSpec((tm_p, lane), lambda i: (i, 0)),
        ),
        compiler_params=pltpu.CompilerParams(
            # rows independent -> megacore/2-TC shardable on v7x
            dimension_semantics=("parallel",),
            # ~8 MB/step footprint at tm_p=1024; 32 MiB is safe headroom on
            # v5e (128 MiB phys), v6e (128 MiB) and v7x (64 MiB).
            vmem_limit_bytes=32 * 1024 * 1024,
        ),
        cost_estimate=cost,
    )(*xs, bd, b_packed)

    # Unpack: (Mp, lane) -> (M_pad, dim) is a free contiguous reshape.
    out = out.reshape(M_pad, dim)
    if M_pad != M:
        out = out[:M]
    return out.reshape(B, L, dim)


if __name__ == "__main__":
    # Small shapes consistent with the module: dim=32, mul=4, batch=2, seq=8.
    B, L, dim, mul = 2, 8, 32, 4

    key = jax.random.PRNGKey(0)
    kfeat, kw, kb = jax.random.split(key, 3)

    # `mul` feature maps of shape (B, L, dim), concatenated along dim=2 in torch.
    feat_keys = jax.random.split(kfeat, mul)
    features = tuple(
        jax.random.normal(k, (B, L, dim), dtype=jnp.float32) for k in feat_keys
    )

    # Deterministic nn.Linear(dim*mul, dim)-shaped parameters.
    fan_in = dim * mul
    bound = 1.0 / (fan_in ** 0.5)
    weight = jax.random.uniform(kw, (dim, fan_in), jnp.float32, -bound, bound)
    bias = jax.random.uniform(kb, (dim,), jnp.float32, -bound, bound)

    out = fusion_forward(features, weight, bias)
    jax.block_until_ready(out)

    # Reference check against plain JAX (same math as torch cat + linear).
    ref = jnp.concatenate(features, axis=2) @ weight.T + bias
    assert out.shape == (B, L, dim)
    assert jnp.allclose(out, ref, atol=1e-5, rtol=1e-5)

    print("KERNEL_OK")
</pallas_src>

<mosaic_0001>
module attributes {stable_mosaic.version = 11 : i64} {
  func.func @kernel(%arg0: i32, %arg1: memref<4x128xf32, #tpu.memory_space<vmem>>, %arg2: memref<4x128xf32, #tpu.memory_space<vmem>>, %arg3: memref<4x128xf32, #tpu.memory_space<vmem>>, %arg4: memref<4x128xf32, #tpu.memory_space<vmem>>, %arg5: memref<512x128xf32, #tpu.memory_space<vmem>>, %arg6: memref<1x128xf32, #tpu.memory_space<vmem>>, %arg7: memref<4x128xf32, #tpu.memory_space<vmem>>) attributes {dimension_semantics = [#tpu.dimension_semantics<parallel>], iteration_bounds = array<i64: 1>, scalar_prefetch = 0 : i64, scratch_operands = 0 : i64, tpu.core_type = #tpu.core_type<tc>, window_params = [{transform_indices = @transform_0, window_bounds = array<i64: 4, 128>}, {transform_indices = @transform_1, window_bounds = array<i64: 4, 128>}, {transform_indices = @transform_2, window_bounds = array<i64: 4, 128>}, {transform_indices = @transform_3, window_bounds = array<i64: 4, 128>}, {pipeline_mode = #tpu.pipeline_mode<synchronous>, transform_indices = @transform_4, window_bounds = array<i64: 512, 128>}, {pipeline_mode = #tpu.pipeline_mode<synchronous>, transform_indices = @transform_5, window_bounds = array<i64: 1, 128>}, {transform_indices = @transform_6, window_bounds = array<i64: 4, 128>}]} {
    %c0 = arith.constant 0 : index
    %c0_0 = arith.constant 0 : index
    %0 = vector.load %arg1[%c0, %c0_0] : memref<4x128xf32, #tpu.memory_space<vmem>>, vector<4x128xf32>
    %c0_1 = arith.constant 0 : index
    %c0_2 = arith.constant 0 : index
    %1 = vector.load %arg2[%c0_1, %c0_2] : memref<4x128xf32, #tpu.memory_space<vmem>>, vector<4x128xf32>
    %c0_3 = arith.constant 0 : index
    %c0_4 = arith.constant 0 : index
    %2 = vector.load %arg3[%c0_3, %c0_4] : memref<4x128xf32, #tpu.memory_space<vmem>>, vector<4x128xf32>
    %c0_5 = arith.constant 0 : index
    %c0_6 = arith.constant 0 : index
    %3 = vector.load %arg4[%c0_5, %c0_6] : memref<4x128xf32, #tpu.memory_space<vmem>>, vector<4x128xf32>
    %4 = tpu.concatenate %0, %1, %2, %3 in 1 : vector<4x128xf32>, vector<4x128xf32>, vector<4x128xf32>, vector<4x128xf32> -> vector<4x512xf32>
    %c0_7 = arith.constant 0 : index
    %c0_8 = arith.constant 0 : index
    %5 = vector.load %arg5[%c0_7, %c0_8] : memref<512x128xf32, #tpu.memory_space<vmem>>, vector<512x128xf32>
    %cst = arith.constant dense<0.000000e+00> : vector<4x128xf32>
    %6 = tpu.matmul %4, %5, %cst {dimension_numbers = #tpu.dot_dimension_numbers<[1], [0], [0], [1], [0, 0, 1, 1], [], []>} : vector<4x512xf32>, vector<512x128xf32>, vector<4x128xf32> -> vector<4x128xf32>
    %c0_9 = arith.constant 0 : index
    %c0_10 = arith.constant 0 : index
    %7 = vector.load %arg6[%c0_9, %c0_10] : memref<1x128xf32, #tpu.memory_space<vmem>>, vector<1x128xf32>
    %8 = vector.broadcast %7 : vector<1x128xf32> to vector<4x128xf32>
    %9 = arith.addf %6, %8 : vector<4x128xf32>
    %c0_11 = arith.constant 0 : index
    %c0_12 = arith.constant 0 : index
    %10 = vector.load %arg7[%c0_11, %c0_12] : memref<4x128xf32, #tpu.memory_space<vmem>>, vector<4x128xf32>
    tpu.vector_store %arg7[%c0_11, %c0_12], %9 {strides = array<i32>} : memref<4x128xf32, #tpu.memory_space<vmem>>, vector<4x128xf32>,
    return
  }
  func.func @transform_0(%arg0: i32) -> (i32, i32) {
    %c0_i32 = arith.constant 0 : i32
    %c0_i32_0 = arith.constant 0 : i32
    return %arg0, %c0_i32 : i32, i32
  }
  func.func @transform_1(%arg0: i32) -> (i32, i32) {
    %c0_i32 = arith.constant 0 : i32
    %c0_i32_0 = arith.constant 0 : i32
    return %arg0, %c0_i32 : i32, i32
  }
  func.func @transform_2(%arg0: i32) -> (i32, i32) {
    %c0_i32 = arith.constant 0 : i32
    %c0_i32_0 = arith.constant 0 : i32
    return %arg0, %c0_i32 : i32, i32
  }
  func.func @transform_3(%arg0: i32) -> (i32, i32) {
    %c0_i32 = arith.constant 0 : i32
    %c0_i32_0 = arith.constant 0 : i32
    return %arg0, %c0_i32 : i32, i32
  }
  func.func @transform_4(%arg0: i32) -> (i32, i32) {
    %c0_i32 = arith.constant 0 : i32
    %c0_i32_0 = arith.constant 0 : i32
    %c0_i32_1 = arith.constant 0 : i32
    return %c0_i32, %c0_i32_0 : i32, i32
  }
  func.func @transform_5(%arg0: i32) -> (i32, i32) {
    %c0_i32 = arith.constant 0 : i32
    %c0_i32_0 = arith.constant 0 : i32
    %c0_i32_1 = arith.constant 0 : i32
    return %c0_i32, %c0_i32_0 : i32, i32
  }
  func.func @transform_6(%arg0: i32) -> (i32, i32) {
    %c0_i32 = arith.constant 0 : i32
    %c0_i32_0 = arith.constant 0 : i32
    return %arg0, %c0_i32 : i32, i32
  }
}

</mosaic_0001>

<bundles_post_ra>
// kernel: tile.8
= control target key start
LH: loop header
LB: loop body
LE: loop exit
PB: predicated region body
PF: predicated region fallthrough
CT: control target
= control target key end

     0   :  { %s22_s0 = inlined_call_operand.vmem [shape: f32[32], index: 0, kind: input, shape index: {}]   ;;  %s23_s1 = inlined_call_operand.vmem [shape: f32[4,32], index: 1, kind: output, shape index: {}]  }
   0x1   :  { %v4_v0 = vld [vmem:[%s22_s0] ss:$0 sm:$0xff] }
   0x2   :  { %5 = vst [vmem:[%s23_s1] sm:$0xf] %v4_v0 }

// kernel: tile.9
= control target key start
LH: loop header
LB: loop body
LE: loop exit
PB: predicated region body
PF: predicated region fallthrough
CT: control target
= control target key end

     0   :  { %vm8_vm0 = vcmask 261120   ;;  %s40_s8 = smov 32   ;;  %s41_s9 = smov 64   ;;  %vm14_vm1 = vcmask 1048320   ;;  %vm20_vm2 = vcmask 785920   ;;  %vm26_vm3 = vcmask 523520   ;;  %s58_s0 = inlined_call_operand.vmem [shape: f32[4,32], index: 0, kind: input, shape index: {}]   ;;  %s59_s1 = inlined_call_operand.vmem [shape: f32[1,128], index: 1, kind: output, shape index: {}]  }
   0x1   :  { %v5_v0 = vld [vmem:[%s58_s0] sm:$0xf]  ;;  %s39_s0 = smov 96  }
   0x2   :  { %6 = vst [vmem:[#allocation1] sm:$0xf] %v5_v0 }
   0x9   :  { %v11_v1 = vld [vmem:[#allocation1 + $0x3] sm:$0x1]   ;;  %v23_v2 = vld [vmem:[#allocation1 + $0x1] sm:$0x1]   ;;  %v7_v3 = vld [vmem:[#allocation1] sm:$0x1]  }
   0xa   :  { %12 = vrot.lane.b32.xlu0 %v11_v1, %s39_s0  ;;  %24 = vrot.lane.b32.xlu1 %v23_v2, %s40_s8  ;;  %v17_v4 = vld [vmem:[#allocation1 + $0x2] sm:$0x1]   ;;  %9 = vst.msk [vmem:[#allocation0] sm:$0x1] %vm8_vm0, %v7_v3  }
   0xe   :  { %18 = vrot.lane.b32.xlu0 %v17_v4, %s41_s9 }
  0x7c   :  { %v13_v5 = vpop.permute.xlu0 %12   ;;  %v25_v6 = vpop.permute.xlu1 %24  }
  0x7d   :  { %15 = vst.msk [vmem:[#allocation0] sm:$0x1] %vm14_vm1, %v13_v5  }
  0x80   :  { %v19_v7 = vpop.permute.xlu0 %18  }
  0x81   :  { %21 = vst.msk [vmem:[#allocation0] sm:$0x1] %vm20_vm2, %v19_v7  }
  0x82   :  { %27 = vst.msk [vmem:[#allocation0] sm:$0x1] %vm26_vm3, %v25_v6  }
  0x89   :  { %v32_v8 = vld [vmem:[#allocation0] sm:$0x1] }
  0x8a   :  { %35 = vst [vmem:[%s59_s1] sm:$0x1] %v32_v8 }

</bundles_post_ra>
